<compile_context>
chip_gen: v6e
topology: v6e:2x2x1
jax: 0.10.0
libtpu: 0.0.40
codegen_flags: <defaults>
</compile_context>

<pallas_src>
import jax
import jax.numpy as jnp
from jax.experimental import pallas as pl
from jax.experimental.pallas import tpu as pltpu

EPS = 1e-8

IN_DIM = 45
H1, H2, H3 = 512, 256, 128
OUT_DIM = 12
OUT_PAD = 128           # lane-dense padded width of the last layer / output


def _elu(x):
    # ELU(alpha=1): x if x > 0 else exp(x) - 1 (clamp keeps exp in range on the
    # unselected branch).  Works both inside kernels and in the reference.
    return jnp.where(x > 0, x, jnp.exp(jnp.minimum(x, 0.0)) - 1.0)


def _round_up(n, m):
    return ((n + m - 1) // m) * m


def _pick_tile(b, block_b):
    # Tile must be a multiple of 8 (sublane rule).  When the batch is big
    # enough, split into >= 2 tiles so the "parallel" grid axis can be sharded
    # across both v7x TensorCores (no effect on single-TC v5e/v6e).
    assert block_b % 8 == 0
    if b < 16:
        return _round_up(b, 8)
    half = _round_up((b + 1) // 2, 8)
    return min(block_b, half)


def _pad_batch(x, tb):
    b = x.shape[0]
    bp = _round_up(b, tb)
    if bp != b:
        x = jnp.pad(x, ((0, bp - b), (0, 0)))
    return x, bp


# ---------------------------------------------------------------------------
# Fused Agent MLP kernel.  obs_rms normalization is folded into w1/b1 by the
# wrapper, so the kernel is 4 matmuls + 3 ELUs on one batch tile.
# ---------------------------------------------------------------------------
def _agent_mlp_kernel(x_ref, w1_ref, b1_ref, w2_ref, b2_ref,
                      w3_ref, b3_ref, w4_ref, b4_ref, out_ref):
    # Weights arrive bf16 (MXU-native on all gens); biases/activations f32.
    h = jnp.dot(x_ref[...].astype(jnp.bfloat16), w1_ref[...],
                preferred_element_type=jnp.float32) + b1_ref[...]
    h = _elu(h)
    h = jnp.dot(h.astype(jnp.bfloat16), w2_ref[...],
                preferred_element_type=jnp.float32) + b2_ref[...]
    h = _elu(h)
    h = jnp.dot(h.astype(jnp.bfloat16), w3_ref[...],
                preferred_element_type=jnp.float32) + b3_ref[...]
    h = _elu(h)
    out_ref[...] = jnp.dot(h.astype(jnp.bfloat16), w4_ref[...],
                           preferred_element_type=jnp.float32) + b4_ref[...]


def _fold_norm_and_cast(params, mean, var):
    """Fold (x - mean) * rsqrt(var + eps) into layer 1 (in f32), pad layer 4 to
    a lane-dense N=128, and cast weight matrices to bf16."""
    mean = mean.astype(jnp.float32)
    inv_std = jax.lax.rsqrt(var.astype(jnp.float32) + EPS)        # (Din,)

    w1 = params["w1"].astype(jnp.float32)
    b1 = params["b1"].astype(jnp.float32).reshape(1, H1)
    w1f = w1 * inv_std[:, None]
    b1f = b1 - (mean * inv_std) @ w1

    w4 = params["w4"].astype(jnp.float32)
    b4 = params["b4"].astype(jnp.float32).reshape(1, OUT_DIM)
    w4p = jnp.pad(w4, ((0, 0), (0, OUT_PAD - OUT_DIM)))
    b4p = jnp.pad(b4, ((0, 0), (0, OUT_PAD - OUT_DIM)))

    return dict(
        w1=w1f.astype(jnp.bfloat16), b1=b1f,
        w2=params["w2"].astype(jnp.bfloat16),
        b2=params["b2"].astype(jnp.float32).reshape(1, H2),
        w3=params["w3"].astype(jnp.bfloat16),
        b3=params["b3"].astype(jnp.float32).reshape(1, H3),
        w4=w4p.astype(jnp.bfloat16), b4=b4p,
    )


def _call_mlp(xp, fp, TB):
    Bp, Din = xp.shape
    grid = (Bp // TB,)

    def whole(shape):
        # Weight/bias blocks: full array, constant block index -> stay resident
        # in VMEM across the batch grid (no re-DMA per step).
        return pl.BlockSpec(shape, lambda i: (0, 0))

    return pl.pallas_call(
        _agent_mlp_kernel,
        out_shape=jax.ShapeDtypeStruct((Bp, OUT_PAD), jnp.float32),
        grid=grid,
        in_specs=[
            pl.BlockSpec((TB, Din), lambda i: (i, 0)),
            whole((Din, H1)), whole((1, H1)),
            whole((H1, H2)), whole((1, H2)),
            whole((H2, H3)), whole((1, H3)),
            whole((H3, OUT_PAD)), whole((1, OUT_PAD)),
        ],
        out_specs=pl.BlockSpec((TB, OUT_PAD), lambda i: (i, 0)),
        compiler_params=pltpu.CompilerParams(
            dimension_semantics=("parallel",)),
    )(xp, fp["w1"], fp["b1"], fp["w2"], fp["b2"],
      fp["w3"], fp["b3"], fp["w4"], fp["b4"])


# ---------------------------------------------------------------------------
# RunningMeanStd statistics pass (update=True): centered moment accumulation.
# ---------------------------------------------------------------------------
def _rms_stats_kernel(x_ref, rm_ref, s1_ref, s2_ref):
    # Resident (1, D) accumulators across the "arbitrary" batch axis.
    @pl.when(pl.program_id(0) == 0)
    def _():
        s1_ref[...] = jnp.zeros_like(s1_ref)
        s2_ref[...] = jnp.zeros_like(s2_ref)

    d = x_ref[...] - rm_ref[...]          # center at running_mean (less cancel)
    s1_ref[...] += jnp.sum(d, axis=0, keepdims=True)
    s2_ref[...] += jnp.sum(d * d, axis=0, keepdims=True)


def _rms_update(xp, B, running_mean, running_var, count, TB):
    """Compute updated (mean, var, count) from padded obs xp (real rows = B)."""
    Bp, D = xp.shape
    rm2d = running_mean.reshape(1, D)

    s1, s2 = pl.pallas_call(
        _rms_stats_kernel,
        out_shape=(jax.ShapeDtypeStruct((1, D), jnp.float32),
                   jax.ShapeDtypeStruct((1, D), jnp.float32)),
        grid=(Bp // TB,),
        in_specs=[pl.BlockSpec((TB, D), lambda i: (i, 0)),
                  pl.BlockSpec((1, D), lambda i: (0, 0))],
        out_specs=(pl.BlockSpec((1, D), lambda i: (0, 0)),
                   pl.BlockSpec((1, D), lambda i: (0, 0))),
        compiler_params=pltpu.CompilerParams(
            dimension_semantics=("arbitrary",)),
    )(xp, rm2d)

    s1 = s1[0]
    s2 = s2[0]
    npad = Bp - B
    if npad:
        # Zero-padded rows each contributed d = -running_mean; remove them.
        s1 = s1 + npad * running_mean
        s2 = s2 - npad * jnp.square(running_mean)

    bc = jnp.float32(B)
    dmean = s1 / bc                                  # = batch_mean - running_mean
    batch_var = jnp.maximum(s2 / bc - jnp.square(dmean), 0.0)

    # Welford-style moment merge: tiny (D,)-length math, stays on the XLA side.
    # TODO(synk): for extremely long runs keep `count` / this merge in f64 host-side.
    tot_count = count + bc
    new_mean = running_mean + dmean * bc / tot_count
    m2 = (running_var * count + batch_var * bc
          + jnp.square(dmean) * count * bc / tot_count)
    new_var = m2 / tot_count
    return new_mean, new_var, tot_count


# ---------------------------------------------------------------------------
# Standalone RunningMeanStd.forward (returns the normalized obs).
# ---------------------------------------------------------------------------
def _rms_normalize_kernel(x_ref, mean_ref, var_ref, out_ref):
    inv_std = jax.lax.rsqrt(var_ref[...] + EPS)            # EUP, (1, D)
    out_ref[...] = (x_ref[...] - mean_ref[...]) * inv_std  # broadcast multiply


def running_mean_std_forward(obs, running_mean, running_var, count,
                             update=True, block_b=2048):
    """obs: (B, D); mean/var: (D,); count: ().  Returns
    (normalized_obs, new_mean, new_var, new_count)."""
    obs = obs.astype(jnp.float32)
    B, D = obs.shape
    TB = _pick_tile(B, block_b)
    xp, Bp = _pad_batch(obs, TB)

    running_mean = running_mean.astype(jnp.float32)
    running_var = running_var.astype(jnp.float32)

    if update:
        new_mean, new_var, new_count = _rms_update(
            xp, B, running_mean, running_var, count, TB)
    else:
        new_mean, new_var, new_count = running_mean, running_var, count

    out = pl.pallas_call(
        _rms_normalize_kernel,
        out_shape=jax.ShapeDtypeStruct((Bp, D), jnp.float32),
        grid=(Bp // TB,),
        in_specs=[pl.BlockSpec((TB, D), lambda i: (i, 0)),
                  pl.BlockSpec((1, D), lambda i: (0, 0)),
                  pl.BlockSpec((1, D), lambda i: (0, 0))],
        out_specs=pl.BlockSpec((TB, D), lambda i: (i, 0)),
        compiler_params=pltpu.CompilerParams(
            dimension_semantics=("parallel",)),
    )(xp, new_mean.reshape(1, D), new_var.reshape(1, D))
    return out[:B], new_mean, new_var, new_count


# ---------------------------------------------------------------------------
# Agent.forward: obs_rms (update optional) + actor MLP, one fused MLP kernel.
# When update=True the normalized obs is never materialized in HBM; the new
# stats are folded straight into w1'/b1'.
# ---------------------------------------------------------------------------
def agent_forward(x, params, update=False, block_b=2048):
    x = x.astype(jnp.float32)
    B, Din = x.shape
    TB = _pick_tile(B, block_b)
    xp, Bp = _pad_batch(x, TB)

    mean = params["rms_mean"].astype(jnp.float32)
    var = params["rms_var"].astype(jnp.float32)

    if update:
        new_mean, new_var, new_count = _rms_update(
            xp, B, mean, var, params["rms_count"], TB)
        mean, var = new_mean, new_var

    fp = _fold_norm_and_cast(params, mean, var)
    out = _call_mlp(xp, fp, TB)[:B, :OUT_DIM]

    if update:
        return out, new_mean, new_var, new_count
    return out


# ---------------------------------------------------------------------------
# Self-test
# ---------------------------------------------------------------------------
if __name__ == "__main__":
    key = jax.random.PRNGKey(0)
    k_obs, k1, k2, k3, k4 = jax.random.split(key, 5)

    B = 50                                   # exercises padding (tile = 16)
    obs = jax.random.normal(k_obs, (B, IN_DIM), dtype=jnp.float32) * 2.0 + 0.5

    running_mean = jnp.zeros((IN_DIM,), jnp.float32)
    running_var = jnp.ones((IN_DIM,), jnp.float32)
    count = jnp.ones((), jnp.float32)

    # Pure-JAX reference for the stats update (torch semantics).
    batch_mean = jnp.mean(obs, axis=0)
    batch_var = jnp.var(obs, axis=0, ddof=0)
    bc = jnp.float32(B)
    delta = batch_mean - running_mean
    tot = count + bc
    ref_mean = running_mean + delta * bc / tot
    ref_var = (running_var * count + batch_var * bc
               + jnp.square(delta) * count * bc / tot) / tot
    ref_norm = (obs - ref_mean) / jnp.sqrt(ref_var + EPS)

    # --- RunningMeanStd.forward(update=True) -------------------------------
    out, nm, nv, nc = running_mean_std_forward(
        obs, running_mean, running_var, count, update=True, block_b=16)
    out = jax.block_until_ready(out)
    assert jnp.allclose(nm, ref_mean, atol=1e-4, rtol=1e-4)
    assert jnp.allclose(nv, ref_var, atol=1e-4, rtol=1e-4)
    assert jnp.allclose(nc, tot)
    assert jnp.allclose(out, ref_norm, atol=1e-4, rtol=1e-4)

    # --- Agent.forward (update=False) vs f32 reference ----------------------
    # TODO(synk): layer_init's orthogonal weight init is parameter setup, not
    # part of the forward pass; plain random weights are used for the test.
    def init_linear(k, fan_in, fan_out, scale=0.1):
        kw, kb = jax.random.split(k)
        w = jax.random.normal(kw, (fan_in, fan_out), jnp.float32) * scale
        b = jax.random.normal(kb, (1, fan_out), jnp.float32) * 0.01
        return w, b

    w1, b1 = init_linear(k1, IN_DIM, H1)
    w2, b2 = init_linear(k2, H1, H2)
    w3, b3 = init_linear(k3, H2, H3)
    w4, b4 = init_linear(k4, H3, OUT_DIM)

    params = dict(rms_mean=nm, rms_var=nv, rms_count=nc,
                  w1=w1, b1=b1, w2=w2, b2=b2, w3=w3, b3=b3, w4=w4, b4=b4)

    hp = jax.lax.Precision.HIGHEST
    xn = (obs - ref_mean) / jnp.sqrt(ref_var + EPS)
    h = _elu(jnp.dot(xn, w1, precision=hp) + b1)
    h = _elu(jnp.dot(h, w2, precision=hp) + b2)
    h = _elu(jnp.dot(h, w3, precision=hp) + b3)
    ref_act = jnp.dot(h, w4, precision=hp) + b4

    act = agent_forward(obs, params, block_b=16)
    act = jax.block_until_ready(act)
    assert act.shape == (B, OUT_DIM)
    # bf16 matmuls -> slightly looser tolerance than the f32 reference.
    assert jnp.allclose(act, ref_act, atol=5e-2, rtol=5e-2)

    # --- Fused training-step path: agent_forward(update=True) ---------------
    params0 = dict(params, rms_mean=running_mean, rms_var=running_var,
                   rms_count=count)
    act2, m2_, v2_, c2_ = agent_forward(obs, params0, update=True, block_b=16)
    act2 = jax.block_until_ready(act2)
    assert jnp.allclose(m2_, ref_mean, atol=1e-4, rtol=1e-4)
    assert jnp.allclose(v2_, ref_var, atol=1e-4, rtol=1e-4)
    assert jnp.allclose(c2_, tot)
    assert jnp.allclose(act2, ref_act, atol=5e-2, rtol=5e-2)

    print("KERNEL_OK")
</pallas_src>

<mosaic_0001>
module attributes {stable_mosaic.version = 11 : i64} {
  func.func @_rms_stats_kernel(%arg0: i32, %arg1: memref<16x45xf32, #tpu.memory_space<vmem>>, %arg2: memref<1x45xf32, #tpu.memory_space<vmem>>, %arg3: memref<1x45xf32, #tpu.memory_space<vmem>>, %arg4: memref<1x45xf32, #tpu.memory_space<vmem>>) attributes {dimension_semantics = [#tpu.dimension_semantics<arbitrary>], iteration_bounds = array<i64: 4>, scalar_prefetch = 0 : i64, scratch_operands = 0 : i64, tpu.core_type = #tpu.core_type<tc>, window_params = [{transform_indices = @transform_0, window_bounds = array<i64: 16, 45>}, {pipeline_mode = #tpu.pipeline_mode<synchronous>, transform_indices = @transform_1, window_bounds = array<i64: 1, 45>}, {pipeline_mode = #tpu.pipeline_mode<synchronous>, transform_indices = @transform_2, window_bounds = array<i64: 1, 45>}, {pipeline_mode = #tpu.pipeline_mode<synchronous>, transform_indices = @transform_3, window_bounds = array<i64: 1, 45>}]} {
    %c0_i32 = arith.constant 0 : i32
    %0 = arith.cmpi eq, %arg0, %c0_i32 : i32
    %1 = arith.extui %0 : i1 to i32
    %c0_i32_0 = arith.constant 0 : i32
    %2 = arith.cmpi ne, %1, %c0_i32_0 : i32
    scf.if %2 {
      %cst_13 = arith.constant 0.000000e+00 : f32
      %18 = vector.broadcast %cst_13 : f32 to vector<1x45xf32>
      %c0_14 = arith.constant 0 : index
      %c0_15 = arith.constant 0 : index
      %19 = vector.load %arg3[%c0_14, %c0_15] : memref<1x45xf32, #tpu.memory_space<vmem>>, vector<1x45xf32>
      tpu.vector_store %arg3[%c0_14, %c0_15], %18 {strides = array<i32>} : memref<1x45xf32, #tpu.memory_space<vmem>>, vector<1x45xf32>,
      %cst_16 = arith.constant 0.000000e+00 : f32
      %20 = vector.broadcast %cst_16 : f32 to vector<1x45xf32>
      %c0_17 = arith.constant 0 : index
      %c0_18 = arith.constant 0 : index
      %21 = vector.load %arg4[%c0_17, %c0_18] : memref<1x45xf32, #tpu.memory_space<vmem>>, vector<1x45xf32>
      tpu.vector_store %arg4[%c0_17, %c0_18], %20 {strides = array<i32>} : memref<1x45xf32, #tpu.memory_space<vmem>>, vector<1x45xf32>,
    } else {
    }
    %c0 = arith.constant 0 : index
    %c0_1 = arith.constant 0 : index
    %3 = vector.load %arg1[%c0, %c0_1] : memref<16x45xf32, #tpu.memory_space<vmem>>, vector<16x45xf32>
    %c0_2 = arith.constant 0 : index
    %c0_3 = arith.constant 0 : index
    %4 = vector.load %arg2[%c0_2, %c0_3] : memref<1x45xf32, #tpu.memory_space<vmem>>, vector<1x45xf32>
    %5 = vector.broadcast %4 : vector<1x45xf32> to vector<16x45xf32>
    %6 = arith.subf %3, %5 : vector<16x45xf32>
    %c0_4 = arith.constant 0 : index
    %c0_5 = arith.constant 0 : index
    %7 = vector.load %arg3[%c0_4, %c0_5] : memref<1x45xf32, #tpu.memory_space<vmem>>, vector<1x45xf32>
    %cst = arith.constant dense<0.000000e+00> : vector<45xf32>
    %8 = vector.multi_reduction <add>, %6, %cst [0] : vector<16x45xf32> to vector<45xf32>
    %9 = vector.shape_cast %8 : vector<45xf32> to vector<1x45xf32>
    %10 = arith.addf %7, %9 : vector<1x45xf32>
    %c0_6 = arith.constant 0 : index
    %c0_7 = arith.constant 0 : index
    %11 = vector.load %arg3[%c0_6, %c0_7] : memref<1x45xf32, #tpu.memory_space<vmem>>, vector<1x45xf32>
    tpu.vector_store %arg3[%c0_6, %c0_7], %10 {strides = array<i32>} : memref<1x45xf32, #tpu.memory_space<vmem>>, vector<1x45xf32>,
    %c0_8 = arith.constant 0 : index
    %c0_9 = arith.constant 0 : index
    %12 = vector.load %arg4[%c0_8, %c0_9] : memref<1x45xf32, #tpu.memory_space<vmem>>, vector<1x45xf32>
    %13 = arith.mulf %6, %6 : vector<16x45xf32>
    %cst_10 = arith.constant dense<0.000000e+00> : vector<45xf32>
    %14 = vector.multi_reduction <add>, %13, %cst_10 [0] : vector<16x45xf32> to vector<45xf32>
    %15 = vector.shape_cast %14 : vector<45xf32> to vector<1x45xf32>
    %16 = arith.addf %12, %15 : vector<1x45xf32>
    %c0_11 = arith.constant 0 : index
    %c0_12 = arith.constant 0 : index
    %17 = vector.load %arg4[%c0_11, %c0_12] : memref<1x45xf32, #tpu.memory_space<vmem>>, vector<1x45xf32>
    tpu.vector_store %arg4[%c0_11, %c0_12], %16 {strides = array<i32>} : memref<1x45xf32, #tpu.memory_space<vmem>>, vector<1x45xf32>,
    return
  }
  func.func @transform_0(%arg0: i32) -> (i32, i32) {
    %c0_i32 = arith.constant 0 : i32
    %c0_i32_0 = arith.constant 0 : i32
    return %arg0, %c0_i32 : i32, i32
  }
  func.func @transform_1(%arg0: i32) -> (i32, i32) {
    %c0_i32 = arith.constant 0 : i32
    %c0_i32_0 = arith.constant 0 : i32
    %c0_i32_1 = arith.constant 0 : i32
    return %c0_i32, %c0_i32_0 : i32, i32
  }
  func.func @transform_2(%arg0: i32) -> (i32, i32) {
    %c0_i32 = arith.constant 0 : i32
    %c0_i32_0 = arith.constant 0 : i32
    %c0_i32_1 = arith.constant 0 : i32
    return %c0_i32, %c0_i32_0 : i32, i32
  }
  func.func @transform_3(%arg0: i32) -> (i32, i32) {
    %c0_i32 = arith.constant 0 : i32
    %c0_i32_0 = arith.constant 0 : i32
    %c0_i32_1 = arith.constant 0 : i32
    return %c0_i32, %c0_i32_0 : i32, i32
  }
}

</mosaic_0001>

<bundles_post_ra>
// kernel: tpu_custom_call.1
= control target key start
LH: loop header
LB: loop body
LE: loop exit
PB: predicated region body
PF: predicated region fallthrough
CT: control target
= control target key end

     0   :  { %9 = vsyncpa [#allocation3], 0  ;;  %s442_s0 = inlined_call_operand.vmem [shape: f32[64,45], index: 0, kind: input, shape index: {}]   ;;  %s443_s1 = inlined_call_operand.vmem [shape: f32[1,45], index: 1, kind: input, shape index: {}]   ;;  %s444_s2 = inlined_call_operand.hbm [shape: f32[1,45], index: 2, kind: output, shape index: {0}]   ;;  %s445_s3 = inlined_call_operand.hbm [shape: f32[1,45], index: 3, kind: output, shape index: {1}]  }
   0x1   :  { %10 = vsyncpa [#allocation5], 0  ;;  %s396_s12 = smov 0  }
   0x2 LB: > { %s402_s13 = sadd.s32 4294967295, %s371_s12   ;;  %p275_p0 = scmp.ge.s32.totalorder %s371_s12, 1  ;;  %s371_s12 = sphi %s396_s12, %s16_s12  }
   0x3   : > { %p133_p1 = scmp.lt.s32.totalorder %s371_s12, 5 }
   0x5   : > { %p134_p2 = pnand %p275_p0, %p133_p1 }
   0x6   : > { %s276_s14 = sshll.u32 (!%p134_p2), %s402_s13, 1  ;;  %p278_p4 = scmp.ne.s32.totalorder (!%p134_p2), %s402_s13, 0 }
   0x7   : > { %137 = sbr.rel (%p134_p2) target bundleno = 58 (0x3a), region = 28  ;;  %p153_p3 = scmp.lt.s32.totalorder (!%p134_p2), %s276_s14, 7 }
   0xc   : > { %s447_s14 = smov (!%p153_p3, %s276_s14), 7  ;;  %161 = sbr.rel (%p278_p4) target bundleno = 19 (0x13), region = 32 }
   0xd   : > { %s277_s15 = sshll.u32 %s447_s14, 3 }
   0xe   : > { %s156_s18 = scalar_lea.vmem %s442_s0, %s277_s15 }
  0x11   : > { %vm162_vm0 = vcmask 360448   ;;  %v373_v0 = vmov 0.0  }
  0x12   : > { %163 = vst.msk [vmem:[#allocation2] sm:$0x1] %vm162_vm0, %v373_v0  ;;  %164 = vst.msk [vmem:[#allocation4] sm:$0x1] %vm162_vm0, %v373_v0 }
  0x13 PF: > { %v165_v1 = vld [vmem:[%s156_s18] sm:$0xff]  ;;  %v166_v2 = vld [vmem:[%s156_s18 + $0x8] sm:$0xff]  ;;  %vm177_vm1 = vcmask 367616   ;;  %s374_s21 = smov [#allocation2]   ;;  %vm188_vm2 = vcmask 360448   ;;  %p294_p5 = scmp.eq.s32.totalorder %s402_s13, 3 }
  0x14   : > { %v279_v3 = vld [vmem:[%s443_s1] ss:$0 sm:$0xff]  ;;  %s211_s22 = sshll.u32 %s374_s21, 4  ;;  %s375_s23 = smov [#allocation4]   ;;  %s212_s22 = int_to_ptr.vmem [resolvable:$true] %s211_s22 }
  0x15   : > { %v174_v4 = vsub.f32 %v165_v1, %v279_v3  ;;  %v175_v5 = vsub.f32 %v166_v2, %v279_v3  ;;  %s222_s24 = sshll.u32 %s375_s23, 4  ;;  %s309_s25 = scalar_lea.vmem %s212_s22, 16  ;;  %s223_s24 = int_to_ptr.vmem [resolvable:$true] %s222_s24 }
  0x16   : > { %p310_p6 = scmp.ne.s32.totalorder %s212_s22, %s309_s25  ;;  %s315_s26 = scalar_lea.vmem %s212_s22, 32 }
  0x17   : > { %v178_v6 = vsel %vm177_vm1, %v174_v4, 0.0  ;;  %v179_v7 = vsel %vm177_vm1, %v175_v5, 0.0  ;;  %v191_v8 = vmul.f32 %v174_v4, %v174_v4  ;;  %v192_v9 = vmul.f32 %v175_v5, %v175_v5  ;;  %p316_p9 = scmp.lt.s32.totalorder %s212_s22, %s212_s22  ;;  %p317_p10 = scmp.lt.s32.totalorder %s315_s26, %s309_s25 }
  0x18   : > { %v180_v10 = vadd.f32 %v179_v7, %v178_v6  ;;  %p311_p7 = pnand %p310_p6, %p294_p5 }
  0x19   : > { %v193_v11 = vsel %vm177_vm1, %v191_v8, 0.0  ;;  %v194_v12 = vsel %vm177_vm1, %v192_v9, 0.0  ;;  %v176_v23 = vld [vmem:[#allocation2] sm:$0x1]  ;;  %v190_v26 = vld [vmem:[#allocation4] sm:$0x1]  ;;  %p318_p11 = por %p317_p10, %p316_p9 }
  0x1a   : > { %v181_v13 = vrot.slane %v180_v10, 4  ;;  %v195_v14 = vadd.f32 %v194_v12, %v193_v11  ;;  %p312_p8 = pneg %p311_p7 }
  0x1c   : > { %v182_v15 = vadd.f32 %v181_v13, %v180_v10  ;;  %v196_v16 = vrot.slane %v195_v14, 4  ;;  %p319_p12 = pnand %p318_p11, %p312_p8 }
  0x1e   : > { %v183_v17 = vrot.slane %v182_v15, 2  ;;  %v197_v18 = vadd.f32 %v196_v16, %v195_v14 }
  0x20   : > { %v184_v19 = vadd.f32 %v183_v17, %v182_v15  ;;  %v198_v20 = vrot.slane %v197_v18, 2 }
  0x22   : > { %v185_v21 = vrot.slane %v184_v19, 1  ;;  %v199_v22 = vadd.f32 %v198_v20, %v197_v18 }
  0x24   : > { %v186_v24 = vadd.f32 %v185_v21, %v184_v19  ;;  %v200_v25 = vrot.slane %v199_v22, 1 }
  0x26   : > { %v187_v27 = vadd.f32 %v186_v24, %v176_v23  ;;  %v201_v28 = vadd.f32 %v200_v25, %v199_v22 }
  0x28   : > { %189 = vst.msk [vmem:[#allocation2] sm:$0x1] %vm188_vm2, %v187_v27  ;;  %v202_v29 = vadd.f32 %v201_v28, %v190_v26 }
  0x29   : > { %322 = shalt.err (!%p319_p12)
}
  0x2a   : > { %287 = dma.vmem_to_hbm [thread:$0]  (%p294_p5), %s212_s22, 16, %s444_s2, [#allocation3]   ;;  %203 = vst.msk [vmem:[#allocation4] sm:$0x1] %vm188_vm2, %v202_v29 }
  0x2b   : > { %s333_s29 = scalar_lea.vmem %s223_s24, 16  ;;  %s339_s30 = scalar_lea.vmem %s223_s24, 32 }
  0x2c   : > { %p334_p13 = scmp.ne.s32.totalorder %s223_s24, %s333_s29  ;;  %p340_p2 = scmp.lt.s32.totalorder %s223_s24, %s223_s24 }
  0x2d   : > { %p341_p3 = scmp.lt.s32.totalorder %s339_s30, %s333_s29 }
  0x2e   : > { %p335_p0 = pnand %p334_p13, %p294_p5 }
  0x2f   : > { %p342_p4 = por %p341_p3, %p340_p2 }
  0x30   : > { %p336_p1 = pneg %p335_p0 }
  0x32   : > { %p343_p6 = pnand %p342_p4, %p336_p1 }
  0x34   : > { %346 = shalt.err (!%p343_p6)
}
  0x35   : > { %289 = dma.vmem_to_hbm [thread:$0]  (%p294_p5), %s223_s24, 16, %s445_s3, [#allocation5]  }
  0x36   : > { %362 = dma.done.wait (%p294_p5), [#allocation3], 16  }
  0x37   : > { %364 = vsyncadd (%p294_p5), [#allocation3], 4294967280 }
  0x38   : > { %366 = dma.done.wait (%p294_p5), [#allocation5], 16  }
  0x39   : > { %368 = vsyncadd (%p294_p5), [#allocation5], 4294967280 }
  0x3a PF: > { %s16_s12 = sadd.s32 1, %s371_s12  }
  0x3b   : > { %p13_p7 = scmp.ge.s32.totalorder %s16_s12, 6  }
  0x3d   :  { %15 = sbr.rel (!%p13_p7) target bundleno = 2 (0x2), region = 67 }
  0x42   :  { %239 = vsyncpa [#allocation3], 1 }
  0x43   :  { %241 = vsyncpa [#allocation3 + $0x1], 1 }
  0x44   :  { %242 = vsyncpa [#allocation5], 1 }

</bundles_post_ra>
